<compile_context>
chip_gen: v7x
topology: tpu7x:2x2x1
jax: 0.10.0
libtpu: 0.0.40
codegen_flags: <defaults>
</compile_context>

<pallas_src>
import jax
import jax.numpy as jnp
from jax.experimental import pallas as pl
from jax.experimental.pallas import tpu as pltpu


def _round_up(x, m):
    return ((x + m - 1) // m) * m


def _perceptron_kernel(x_ref, w_ref, b_ref, o_ref):
    # x_ref: (TB, D) f32 VMEM tile (boundary-block rows past B are garbage —
    #        harmless: no cross-row reduction, and those outputs are sliced off).
    # w_ref: (1, D) f32 VMEM, resident across grid steps.
    # b_ref: (1,)  f32 SMEM scalar.
    # o_ref: (1, TB) f32 VMEM — lane-dense output block.
    x = x_ref[...]
    w = w_ref[...]
    z = jnp.sum(x * w, axis=-1, keepdims=True)        # VPU mul + XLU row-reduce -> (TB, 1)
    y = jax.nn.sigmoid(z + b_ref[0])                  # EUP; scalar bias broadcast
    o_ref[...] = y.reshape(o_ref.shape).astype(o_ref.dtype)  # (TB,1)->(1,TB) relayout (XLU)


def _vmem_budgets():
    """Returns (target x HBM bytes per step, total x VMEM budget, vmem_limit cap)."""
    try:
        vmem_phys = pltpu.get_tpu_info().vmem_capacity_bytes
    except Exception:
        vmem_phys = 64 << 20                       # conservative (v7x-class)
    if vmem_phys <= (64 << 20):                    # v7x: 64 MiB VMEM, ~3.2 TB/s HBM
        return 8 << 20, 24 << 20, 52 << 20
    return 4 << 20, 16 << 20, 64 << 20             # v5e/v6e: 128 MiB physical VMEM


def _choose_batch_tile(B, D, *, target_x_bytes, x_vmem_budget):
    """Rows per grid step, sized by bytes (no arbitrary row cap).

    - aims for ~target_x_bytes of *actual* x HBM traffic per step (amortizes the
      ~0.35us fixed per-step overhead),
    - keeps the double-buffered, lane-padded x tile inside x_vmem_budget,
    - returns a multiple of 128 whenever more than one grid step is used
      (needed for the lane-dense (1, TB) output blocks).
    """
    d_lanes = _round_up(D, 128)                                    # VMEM lane padding
    fit_rows = max(128, (x_vmem_budget // (2 * d_lanes * 4)) // 128 * 128)
    want_rows = max(128, _round_up(max(1, target_x_bytes // (D * 4)), 128))
    tb = min(fit_rows, want_rows)
    if B <= tb:
        if B * D * 4 >= (1 << 20):
            # Big enough to split across 2 TensorCores (v7x megacore): >=2 steps.
            tb = min(tb, max(128, _round_up(pl.cdiv(B, 2), 128)))
        else:
            tb = _round_up(B, 8)       # single step covers the whole (small) batch
    return tb


def _vmem_estimate_bytes(TB, D):
    """Rough VMEM footprint of the pipelined blocks (f32, (8,128)-tile padded)."""
    d_lanes = _round_up(D, 128)
    tb_lanes = _round_up(TB, 128)
    x_tile = _round_up(TB, 8) * d_lanes * 4
    w_tile = 8 * d_lanes * 4
    out_tile = 8 * tb_lanes * 4
    return 2 * x_tile + 2 * w_tile + 2 * out_tile


def perceptron_forward(x, w, b, *, batch_tile=None):
    """sigmoid(x @ W.T + b)  ==  torch.sigmoid(nn.Linear(D, 1)(x)).

    x: [B, D] f32; w: PyTorch-layout weight with D elements (e.g. [1, D]);
    b: scalar / (1,) f32.  Returns [B, 1] f32.
    If batch_tile is given and does not cover B, it must be a multiple of 128.
    """
    B, D = x.shape
    x = x.astype(jnp.float32)
    w = jnp.asarray(w, jnp.float32).reshape(1, D)     # nn.Linear weight row [1, D]
    b = jnp.asarray(b, jnp.float32).reshape(1)

    target_x_bytes, x_vmem_budget, vmem_cap = _vmem_budgets()
    TB = batch_tile if batch_tile is not None else _choose_batch_tile(
        B, D, target_x_bytes=target_x_bytes, x_vmem_budget=x_vmem_budget)

    grid = pl.cdiv(B, TB)              # no jnp.pad: boundary block is masked
    vmem_limit = int(min(max(_vmem_estimate_bytes(TB, D) + (8 << 20), 16 << 20),
                         vmem_cap))

    out = pl.pallas_call(
        _perceptron_kernel,
        out_shape=jax.ShapeDtypeStruct((1, grid * TB), jnp.float32),
        grid=(grid,),
        in_specs=[
            pl.BlockSpec((TB, D), lambda i: (i, 0)),            # streamed x tiles
            pl.BlockSpec((1, D), lambda i: (0, 0)),             # resident weight row
            pl.BlockSpec(memory_space=pltpu.MemorySpace.SMEM),  # scalar bias in SMEM
        ],
        out_specs=pl.BlockSpec((1, TB), lambda i: (0, i)),      # lane-dense output
        compiler_params=pltpu.CompilerParams(
            dimension_semantics=("parallel",),
            vmem_limit_bytes=vmem_limit,
        ),
        cost_estimate=pl.CostEstimate(
            flops=2 * B * D,
            transcendentals=B,
            bytes_accessed=4 * (B * D + D + B),
        ),
    )(x, w, b)

    return out.reshape(-1)[:B].reshape(B, 1)


def reference_forward(x, w, b):
    D = x.shape[-1]
    w_row = jnp.asarray(w, jnp.float32).reshape(1, D)
    return jax.nn.sigmoid(x @ w_row.T + jnp.asarray(b, jnp.float32).reshape(1, 1))


if __name__ == "__main__":
    key = jax.random.PRNGKey(0)
    k_x, k_w, k_b = jax.random.split(key, 3)

    batch, input_size = 8, 32

    x = jax.random.normal(k_x, (batch, input_size), dtype=jnp.float32)
    # Deterministic "Kaiming-uniform-like" init, same shapes as nn.Linear(input_size, 1).
    bound = 1.0 / (input_size ** 0.5)
    w = jax.random.uniform(k_w, (1, input_size), minval=-bound, maxval=bound,
                           dtype=jnp.float32)
    b = jax.random.uniform(k_b, (1,), minval=-bound, maxval=bound,
                           dtype=jnp.float32)

    out = jax.block_until_ready(perceptron_forward(x, w, b))
    ref = reference_forward(x, w, b)
    assert out.shape == (batch, 1)
    assert jnp.allclose(out, ref, atol=1e-5, rtol=1e-5)

    # Ragged batch (not a multiple of 8) exercises the masked boundary block.
    x2 = jax.random.normal(key, (10, input_size), dtype=jnp.float32)
    out2 = jax.block_until_ready(perceptron_forward(x2, w, b))
    assert out2.shape == (10, 1)
    assert jnp.allclose(out2, reference_forward(x2, w, b), atol=1e-5, rtol=1e-5)

    # Multi-step grid path (streamed tiles + lane-dense 128-wide output blocks
    # + partial boundary block), using an explicit small tile for coverage.
    x3 = jax.random.normal(k_w, (390, input_size), dtype=jnp.float32)
    out3 = jax.block_until_ready(perceptron_forward(x3, w, b, batch_tile=128))
    assert out3.shape == (390, 1)
    assert jnp.allclose(out3, reference_forward(x3, w, b), atol=1e-5, rtol=1e-5)

    print("KERNEL_OK")
</pallas_src>

<mosaic_0001>
module attributes {stable_mosaic.version = 11 : i64} {
  func.func @_perceptron_kernel(%arg0: i32, %arg1: memref<8x32xf32, #tpu.memory_space<vmem>>, %arg2: memref<1x32xf32, #tpu.memory_space<vmem>>, %arg3: memref<1xf32, #tpu.memory_space<smem>>, %arg4: memref<1x8xf32, #tpu.memory_space<vmem>>) attributes {dimension_semantics = [#tpu.dimension_semantics<parallel>], iteration_bounds = array<i64: 1>, scalar_prefetch = 0 : i64, scratch_operands = 0 : i64, tpu.core_type = #tpu.core_type<tc>, window_params = [{transform_indices = @transform_0, window_bounds = array<i64: 8, 32>}, {pipeline_mode = #tpu.pipeline_mode<synchronous>, transform_indices = @transform_1, window_bounds = array<i64: 1, 32>}, {transform_indices = @transform_2, window_bounds = array<i64: 1>}, {transform_indices = @transform_3, window_bounds = array<i64: 1, 8>}]} {
    %c0 = arith.constant 0 : index
    %c0_0 = arith.constant 0 : index
    %0 = vector.load %arg1[%c0, %c0_0] : memref<8x32xf32, #tpu.memory_space<vmem>>, vector<8x32xf32>
    %c0_1 = arith.constant 0 : index
    %c0_2 = arith.constant 0 : index
    %1 = vector.load %arg2[%c0_1, %c0_2] : memref<1x32xf32, #tpu.memory_space<vmem>>, vector<1x32xf32>
    %2 = vector.broadcast %1 : vector<1x32xf32> to vector<8x32xf32>
    %3 = arith.mulf %0, %2 : vector<8x32xf32>
    %cst = arith.constant dense<0.000000e+00> : vector<8xf32>
    %4 = vector.multi_reduction <add>, %3, %cst [1] : vector<8x32xf32> to vector<8xf32>
    %5 = vector.shape_cast %4 : vector<8xf32> to vector<8x1xf32>
    %c0_3 = arith.constant 0 : index
    %6 = memref.load %arg3[%c0_3] : memref<1xf32, #tpu.memory_space<smem>>
    %7 = vector.broadcast %6 : f32 to vector<8x1xf32>
    %8 = arith.addf %5, %7 : vector<8x1xf32>
    %9 = arith.negf %8 : vector<8x1xf32>
    %10 = math.exp %9 : vector<8x1xf32>
    %cst_4 = arith.constant 1.000000e+00 : f32
    %11 = vector.broadcast %cst_4 : f32 to vector<8x1xf32>
    %12 = arith.addf %11, %10 : vector<8x1xf32>
    %13 = arith.divf %11, %12 : vector<8x1xf32>
    %14 = vector.shape_cast %13 : vector<8x1xf32> to vector<1x8xf32>
    %c0_5 = arith.constant 0 : index
    %c0_6 = arith.constant 0 : index
    %15 = vector.load %arg4[%c0_5, %c0_6] : memref<1x8xf32, #tpu.memory_space<vmem>>, vector<1x8xf32>
    tpu.vector_store %arg4[%c0_5, %c0_6], %14 {strides = array<i32>} : memref<1x8xf32, #tpu.memory_space<vmem>>, vector<1x8xf32>,
    return
  }
  func.func @transform_0(%arg0: i32) -> (i32, i32) {
    %c0_i32 = arith.constant 0 : i32
    %c0_i32_0 = arith.constant 0 : i32
    return %arg0, %c0_i32 : i32, i32
  }
  func.func @transform_1(%arg0: i32) -> (i32, i32) {
    %c0_i32 = arith.constant 0 : i32
    %c0_i32_0 = arith.constant 0 : i32
    %c0_i32_1 = arith.constant 0 : i32
    return %c0_i32, %c0_i32_0 : i32, i32
  }
  func.func @transform_2(%arg0: i32) -> i32 {
    %c0_i32 = arith.constant 0 : i32
    %c0_i32_0 = arith.constant 0 : i32
    return %c0_i32 : i32
  }
  func.func @transform_3(%arg0: i32) -> (i32, i32) {
    %c0_i32 = arith.constant 0 : i32
    %c0_i32_0 = arith.constant 0 : i32
    return %c0_i32, %arg0 : i32, i32
  }
}

</mosaic_0001>

<bundles_post_ra>
// kernel: tpu_custom_call.1
= control target key start
LH: loop header
LB: loop body
LE: loop exit
PB: predicated region body
PF: predicated region fallthrough
CT: control target
= control target key end

     0   :  { %9 = vsyncpa [#allocation4], 0  ;;  %s183_s0 = inlined_call_operand.hbm [shape: f32[8,32], index: 0, kind: input, shape index: {}]   ;;  %s184_s1 = inlined_call_operand.vmem [shape: f32[1,32], index: 1, kind: input, shape index: {}]   ;;  %s185_s2 = inlined_call_operand.<no memory space> [shape: f32[1], index: 2, kind: input, shape index: {}]   ;;  %s186_s3 = inlined_call_operand.hbm [shape: f32[1,8], index: 3, kind: output, shape index: {}]  }
   0x1   :  { %10 = vsyncpa [#allocation5], 0  ;;  %s131_s12 = smov [#allocation3]   ;;  %s83_s16 = scalar_lea.hbm %s183_s0, 128 }
   0x2   :  { %s17_s13 = sshll.u32 %s131_s12, 4  ;;  %p84_p0 = scmp.ne.s32.totalorder %s183_s0, %s83_s16  ;;  %s18_s13 = int_to_ptr.vmem [resolvable:$true] %s17_s13 }
   0x3   :  { %p87_p1 = scmp.lt.u32.totalorder %s83_s16, %s183_s0 }
   0x5   :  { %p89_p2 = pnand %p87_p1, %p84_p0 }
   0x7   :  { %92 = shalt.err (!%p89_p2)
}
   0x8   :  { %s93_s21 = scalar_lea.vmem %s18_s13, 128  ;;  %p98_p4 = scmp.lt.s32.totalorder %s18_s13, %s18_s13 }
   0x9   :  { %p94_p3 = scmp.ne.s32.totalorder %s18_s13, %s93_s21  ;;  %p99_p5 = scmp.lt.s32.totalorder %s93_s21, %s93_s21 }
   0xb   :  { %p100_p6 = por %p99_p5, %p98_p4 }
   0xd   :  { %p101_p7 = pnand %p100_p6, %p94_p3 }
   0xf   :  { %104 = shalt.err (!%p101_p7)
}
  0x10   :  { %20 = dma.hbm_to_vmem [thread:$0]  %s183_s0, 128, %s18_s13, [#allocation4]  }
  0x11   :  { %127 = dma.done.wait [#allocation4], 128  }
  0x12   :  { %128 = vsyncadd [#allocation4], 4294967168  ;;  %v28_v0 = vld [vmem:[#allocation3] sm:$0xff]  ;;  %vm37_vm0 = vcmask 261120   ;;  %v42_v4 = vstv %s185_s2  ;;  %v51_v10 = vlaneseq  ;;  %s132_s0 = smov [#allocation6]   ;;  %vm58_vm1 = vcmask 57344  }
  0x13   :  { %v75_v1 = vld [vmem:[%s184_s1] ss:$0 sm:$0xff]  ;;  %s66_s1 = sshll.u32 %s132_s0, 4  ;;  %s67_s1 = int_to_ptr.vmem [resolvable:$true] %s66_s1 }
  0x14   :  { %v36_v2 = vmul.f32 %v75_v1, %v28_v0  ;;  %v52_v11 = vand.u32 127, %v51_v10  ;;  %v54_v12 = vshrl.u32 %v51_v10, 7  ;;  %s105_s28 = scalar_lea.vmem %s67_s1, 16  ;;  %s109_s2 = scalar_lea.vmem %s67_s1, 32 }
  0x15   :  { %p106_p8 = scmp.ne.s32.totalorder %s67_s1, %s105_s28  ;;  %p110_p9 = scmp.lt.s32.totalorder %s67_s1, %s67_s1 }
  0x16   :  { %v38_v3 = vsel %vm37_vm0, %v36_v2, 0.0  ;;  %v55_v13 = vsub.s32 %v52_v11, %v54_v12  ;;  %p111_p10 = scmp.lt.s32.totalorder %s109_s2, %s105_s28 }
  0x17   :  { %39 = vadd.xlane.f32.xlu0 %v38_v3 }
  0x18   :  { %p112_p11 = por %p111_p10, %p110_p9 }
  0x1a   :  { %p113_p12 = pnand %p112_p11, %p106_p8 }
  0xa4   :  { %v40_v5 = vpop.xlane.xlu0 %39 }
  0xa5   :  { %v43_v6 = vadd.f32 %v42_v4, %v40_v5 }
  0xa7   :  { %v76_v7 = vmul.f32 -1.442695, %v43_v6 }
  0xa9   :  { %79 = vpow2.f32 %v76_v7 }
  0xb3   :  { %v80_v8 = vpop.eup %79 }
  0xb4   :  { %v47_v9 = vadd.f32 1.0, %v80_v8 }
  0xb6   :  { %81 = vrcp.f32 %v47_v9 }
  0xc0   :  { %v82_v14 = vpop.eup %81 }
  0xc1   :  { %v56_v15 = vrot.slane %v82_v14, %v55_v13 }
  0xc3   :  { %59 = vst.msk [vmem:[#allocation6] sm:$0x1] %vm58_vm1, %v56_v15 }
  0xc4   :  { %116 = shalt.err (!%p113_p12)
}
  0xc5   :  { %s117_s4 = scalar_lea.hbm %s186_s3, 16 }
  0xc6   :  { %p118_p13 = scmp.ne.s32.totalorder %s186_s3, %s117_s4  ;;  %p121_p0 = scmp.lt.u32.totalorder %s117_s4, %s186_s3 }
  0xc8   :  { %p123_p1 = pnand %p121_p0, %p118_p13 }
  0xca   :  { %126 = shalt.err (!%p123_p1)
}
  0xcb   :  { %69 = dma.vmem_to_hbm [thread:$0]  %s67_s1, 16, %s186_s3, [#allocation5]  }
  0xcc   :  { %129 = dma.done.wait [#allocation5], 16  }
  0xcd   :  { %130 = vsyncadd [#allocation5], 4294967280 }
  0xce   :  { %73 = vsyncpa [#allocation4], 1 }
  0xcf   :  { %74 = vsyncpa [#allocation5], 1 }

</bundles_post_ra>
